<compile_context>
chip_gen: v5e
topology: v5e:2x2
jax: 0.10.0
libtpu: 0.0.40
codegen_flags: <defaults>
</compile_context>

<pallas_src>
import functools

import jax
import jax.numpy as jnp
from jax import lax
from jax.experimental import pallas as pl
from jax.experimental.pallas import tpu as pltpu


# ----------------------------------------------------------------------------
# Pallas kernel: adapter Linear  y = x @ W + b
#   x: [M_pad, K] bf16 (resident, whole), w: [K, TN] bf16 tile (streamed),
#   b: [1, TN] f32 tile, o: [M_pad, TN] f32 tile.
#   K is kept whole so there is no accumulator / pl.when init.
# ----------------------------------------------------------------------------
def _adapter_kernel(x_ref, w_ref, b_ref, o_ref):
    acc = jnp.dot(x_ref[...], w_ref[...], preferred_element_type=jnp.float32)
    o_ref[...] = (acc + b_ref[...]).astype(o_ref.dtype)


def _round_up(x, m):
    return (x + m - 1) // m * m


def _device_vmem_and_cores():
    """Physical VMEM bytes and TensorCore count (conservative fallbacks)."""
    vmem_cap = 64 << 20  # v7x-safe fallback (smallest VMEM of the three gens)
    try:
        info = pltpu.get_tpu_info()
        vmem_cap = int(getattr(info, "vmem_capacity_bytes", vmem_cap))
    except Exception:
        pass
    kind = ""
    try:
        kind = jax.devices()[0].device_kind.lower()
    except Exception:
        pass
    num_tc = 2 if "v7" in kind else 1  # v7x: 2 TCs/chip; v5e/v6e: 1
    return vmem_cap, num_tc


def _tile_plan(m_pad, k, n_pad, vmem_cap, num_tc):
    """Pick (TN, grid_n, w_buffers, est_vmem_bytes).

    Largest lane-dense TN (multiple of 128 dividing n_pad) such that the
    pipelined buffers fit the VMEM budget AND grid_n >= 2*num_tensorcores
    (relaxed when N itself is too small to provide that many 128-wide tiles).
    """
    budget = int(0.6 * vmem_cap)
    target_grid = max(2, 2 * num_tc)
    min_grid = max(1, min(target_grid, n_pad // 128))

    def usage(tn, w_bufs):
        # bf16 packs 16 sublanes/vreg, f32 packs 8; last dim pads to 128 lanes.
        x_b = 2 * _round_up(m_pad, 16) * max(_round_up(k, 128), 128) * 2  # x (bf16)
        w_b = w_bufs * _round_up(k, 16) * tn * 2                          # W tiles (bf16)
        b_b = 2 * 8 * tn * 4                                              # bias tiles (f32)
        o_b = 2 * _round_up(m_pad, 8) * tn * 4                            # out tiles (f32)
        return x_b + w_b + b_b + o_b

    candidates = [t for t in range(128, n_pad + 1, 128) if n_pad % t == 0]
    candidates.sort(reverse=True)
    for tn in candidates:
        grid_n = n_pad // tn
        if grid_n < min_grid:
            continue
        w_bufs = 3 if grid_n >= 3 else 2
        u = usage(tn, w_bufs)
        if u * 1.2 <= budget:
            return tn, grid_n, w_bufs, u
    tn = 128  # absolute fallback: smallest lane-dense tile always fits
    grid_n = n_pad // tn
    w_bufs = 3 if grid_n >= 3 else 2
    return tn, grid_n, w_bufs, usage(tn, w_bufs)


def adapter_linear(x, w, b):
    """x: [M, K] f32, w: [K, N] bf16, b: [N] f32 -> [M, N] f32.

    HBM-bandwidth-bound weight stream: W is tiled over the output (N) axis with
    lane-dense tiles; x stays resident; accumulation is f32 on the MXU.
    """
    M, K = x.shape
    K2, N = w.shape
    assert K == K2 and b.shape == (N,)

    vmem_cap, num_tc = _device_vmem_and_cores()

    M_pad = _round_up(M, 8)     # whole sublane groups -> no masked stores
    N_pad = _round_up(N, 128)   # lane-dense tiles even for ragged N

    x_bf16 = x.astype(jnp.bfloat16)
    if M_pad != M:
        x_bf16 = jnp.pad(x_bf16, ((0, M_pad - M), (0, 0)))
    if N_pad != N:
        # NOTE: for production, pad W/b once at parameter-setup time instead of
        # per call (realistic N = num_prefix*4096 is already a multiple of 128).
        w = jnp.pad(w, ((0, 0), (0, N_pad - N)))
        b = jnp.pad(b, (0, N_pad - N))
    w_bf16 = w.astype(jnp.bfloat16)
    b2 = b.reshape(1, N_pad).astype(jnp.float32)

    TN, grid_n, w_bufs, est_vmem = _tile_plan(M_pad, K, N_pad, vmem_cap, num_tc)

    # Device-aware VMEM limit: derived from the chosen tiling, capped at 75% of
    # physical VMEM (so it is always legal on v7x's 64 MiB).
    vmem_limit = int(min(max(int(1.3 * est_vmem), 32 << 20), int(0.75 * vmem_cap)))

    # Deeper pipelining on the streamed W when there are enough grid steps.
    if w_bufs > 2:
        w_spec = pl.BlockSpec((K, TN), lambda j: (0, j),
                              pipeline_mode=pl.Buffered(w_bufs))
    else:
        w_spec = pl.BlockSpec((K, TN), lambda j: (0, j))

    # Bias is streamed as tiny (1, TN) tiles; at grid_n <= 4 the per-step bias
    # DMA is negligible (TN*4 bytes) and avoids dynamic lane-slicing in-kernel.
    out = pl.pallas_call(
        _adapter_kernel,
        out_shape=jax.ShapeDtypeStruct((M_pad, N_pad), jnp.float32),
        grid_spec=pl.GridSpec(
            grid=(grid_n,),
            in_specs=[
                pl.BlockSpec((M_pad, K), lambda j: (0, 0)),   # x: resident, whole
                w_spec,                                       # W: streamed over N
                pl.BlockSpec((1, TN), lambda j: (0, j)),      # bias tile
            ],
            out_specs=pl.BlockSpec((M_pad, TN), lambda j: (0, j)),
        ),
        compiler_params=pltpu.CompilerParams(
            dimension_semantics=("parallel",),   # v7x: shard N tiles across 2 TCs
            vmem_limit_bytes=vmem_limit,
        ),
    )(x_bf16, w_bf16, b2)

    return out[:M, :N]


# ----------------------------------------------------------------------------
# PretrainKGEmbedding.forward  (triple branch: triple_ids.shape[1] == 3)
# ----------------------------------------------------------------------------
def pretrain_kg_embedding_forward(params, triple_ids):
    """triple_ids: [B, 3] int32 -> prefix: [B, 3*num_prefix, dim_llm] f32."""
    num_prefix = params["num_prefix"]
    dim_llm = params["dim_llm"]

    # TODO(synk): the three gathers + stack + bf16 cast could be fused into the
    # pallas_call via PrefetchScalarGridSpec + row-gather DMA; kept as XLA glue
    # since x is tiny ([B*3, pretrain_dim]).
    head, relation, tail = triple_ids[:, 0], triple_ids[:, 1], triple_ids[:, 2]
    h = jnp.take(params["ent_emb"], head, axis=0)      # [B, P]
    r = jnp.take(params["rel_emb"], relation, axis=0)  # [B, P]
    t = jnp.take(params["ent_emb"], tail, axis=0)      # [B, P]
    pretrain_embs = jnp.stack((h, r, t), axis=1)        # [B, 3, P]

    B = pretrain_embs.shape[0]
    x = pretrain_embs.reshape(B * 3, -1)                # [B*3, P]
    y = adapter_linear(x, params["adapter_w"], params["adapter_b"])
    prefix = y.reshape(B, 3 * num_prefix, dim_llm)
    return prefix


# ----------------------------------------------------------------------------
# KoPAWithAdapter.forward (up to — but not including — the Llama call)
# ----------------------------------------------------------------------------
def kopa_forward(params, input_ids, attention_mask, labels, embedding_ids):
    kg_embeds = pretrain_kg_embedding_forward(params, embedding_ids)  # [B, 3*np, D]
    batch_size, prefix_len, dim_llm = kg_embeds.shape
    seq = input_ids.shape[1]

    token_embeds = jnp.take(params["embed_tokens"], input_ids, axis=0)  # [B, S, D]

    # Preallocated slab + in-place updates instead of a full-copy concatenate.
    # TODO(synk): emit bf16 here (and in the adapter output) if the downstream
    # Llama runs in bf16 — halves the HBM traffic of this (dominant) stage.
    input_embeds = jnp.zeros((batch_size, prefix_len + seq, dim_llm),
                             dtype=token_embeds.dtype)
    input_embeds = lax.dynamic_update_slice(
        input_embeds, kg_embeds.astype(token_embeds.dtype), (0, 0, 0))
    input_embeds = lax.dynamic_update_slice(
        input_embeds, token_embeds, (0, prefix_len, 0))

    prefix_mask = jnp.ones((batch_size, prefix_len), dtype=attention_mask.dtype)
    prefix_labels = jnp.full((batch_size, prefix_len), -100, dtype=labels.dtype)
    new_attention_mask = jnp.concatenate((prefix_mask, attention_mask), axis=-1)
    new_labels = jnp.concatenate((prefix_labels, labels), axis=-1)

    # TODO(synk): full LlamaForCausalLM forward is out of scope; return the
    # tensors that would be passed to self.llama_model(...).
    return input_embeds, new_attention_mask, new_labels


# ----------------------------------------------------------------------------
# Deterministic parameter construction + example run
# ----------------------------------------------------------------------------
def make_params(key, *, num_ent, num_rel, pretrain_dim, dim_llm, num_prefix, vocab):
    k1, k2, k3, k4, k5 = jax.random.split(key, 5)
    emb_dim = num_prefix * dim_llm
    return {
        "num_prefix": num_prefix,
        "dim_llm": dim_llm,
        "ent_emb": jax.random.normal(k1, (num_ent, pretrain_dim), jnp.float32),
        "rel_emb": jax.random.normal(k2, (num_rel, pretrain_dim), jnp.float32),
        # nn.Linear(pretrain_dim, emb_dim): weight stored transposed [in, out], bf16.
        # TODO(synk): device-gated compression (int8+scales on v5e/v6e, fp8 on v7x)
        # would halve the streamed bytes again.
        "adapter_w": (jax.random.normal(k3, (pretrain_dim, emb_dim), jnp.float32) * 0.05
                      ).astype(jnp.bfloat16),
        "adapter_b": jax.random.normal(k4, (emb_dim,), jnp.float32) * 0.01,
        # llama_model.model.model.embed_tokens
        "embed_tokens": jax.random.normal(k5, (vocab, dim_llm), jnp.float32) * 0.02,
    }


if __name__ == "__main__":
    # Small, module-consistent shapes (dim_llm=4096 in the original -> 96 here,
    # chosen so N = num_prefix*dim_llm = 192 exercises the ragged-N padding path
    # and a multi-step (grid_n >= 2) W stream).
    NUM_ENT, NUM_REL = 32, 8
    PRETRAIN_DIM = 16
    DIM_LLM = 96
    NUM_PREFIX = 2
    VOCAB = 100
    B, SEQ = 2, 8

    key = jax.random.PRNGKey(0)
    kp, ki, ke = jax.random.split(key, 3)
    params = make_params(kp, num_ent=NUM_ENT, num_rel=NUM_REL,
                         pretrain_dim=PRETRAIN_DIM, dim_llm=DIM_LLM,
                         num_prefix=NUM_PREFIX, vocab=VOCAB)

    input_ids = jax.random.randint(ki, (B, SEQ), 0, VOCAB, dtype=jnp.int32)
    attention_mask = jnp.ones((B, SEQ), dtype=jnp.float32)
    labels = jax.random.randint(ke, (B, SEQ), 0, VOCAB, dtype=jnp.int32)
    # embedding_ids: [B, 3] triples (head, relation, tail)
    embedding_ids = jnp.array([[1, 2, 3], [5, 1, 7]], dtype=jnp.int32)

    fwd = jax.jit(functools.partial(kopa_forward, params))
    input_embeds, new_mask, new_labels = fwd(input_ids, attention_mask, labels,
                                             embedding_ids)
    jax.block_until_ready((input_embeds, new_mask, new_labels))

    # Shape sanity: [B, 3*num_prefix + SEQ, dim_llm]
    assert input_embeds.shape == (B, 3 * NUM_PREFIX + SEQ, DIM_LLM)
    assert new_mask.shape == (B, 3 * NUM_PREFIX + SEQ)
    assert new_labels.shape == (B, 3 * NUM_PREFIX + SEQ)

    # Correctness check of the Pallas adapter matmul vs. plain JAX
    # (same bf16 inputs, f32 accumulation + f32 bias).
    h = params["ent_emb"][embedding_ids[:, 0]]
    r = params["rel_emb"][embedding_ids[:, 1]]
    t = params["ent_emb"][embedding_ids[:, 2]]
    x_ref = jnp.stack((h, r, t), axis=1).reshape(B * 3, -1)
    x_ref_bf = x_ref.astype(jnp.bfloat16).astype(jnp.float32)
    w_f32 = params["adapter_w"].astype(jnp.float32)
    y_ref = (x_ref_bf @ w_f32 + params["adapter_b"]).reshape(B, 3 * NUM_PREFIX, DIM_LLM)
    assert jnp.allclose(input_embeds[:, : 3 * NUM_PREFIX, :], y_ref,
                        atol=1e-3, rtol=1e-3)

    # Token-embedding rows of the slab must equal the plain gather.
    tok_ref = params["embed_tokens"][input_ids]
    assert jnp.allclose(input_embeds[:, 3 * NUM_PREFIX:, :], tok_ref)

    print("KERNEL_OK")
</pallas_src>

<mosaic_0001>
module attributes {stable_mosaic.version = 11 : i64} {
  func.func @_adapter_kernel(%arg0: i32, %arg1: memref<8x16xbf16, #tpu.memory_space<vmem>>, %arg2: memref<16x128xbf16, #tpu.memory_space<vmem>>, %arg3: memref<1x128xf32, #tpu.memory_space<vmem>>, %arg4: memref<8x128xf32, #tpu.memory_space<vmem>>) attributes {dimension_semantics = [#tpu.dimension_semantics<parallel>], iteration_bounds = array<i64: 2>, scalar_prefetch = 0 : i64, scratch_operands = 0 : i64, tpu.core_type = #tpu.core_type<tc>, window_params = [{pipeline_mode = #tpu.pipeline_mode<synchronous>, transform_indices = @transform_0, window_bounds = array<i64: 8, 16>}, {transform_indices = @transform_1, window_bounds = array<i64: 16, 128>}, {transform_indices = @transform_2, window_bounds = array<i64: 1, 128>}, {transform_indices = @transform_3, window_bounds = array<i64: 8, 128>}]} {
    %c0 = arith.constant 0 : index
    %c0_0 = arith.constant 0 : index
    %0 = vector.load %arg1[%c0, %c0_0] : memref<8x16xbf16, #tpu.memory_space<vmem>>, vector<8x16xbf16>
    %c0_1 = arith.constant 0 : index
    %c0_2 = arith.constant 0 : index
    %1 = vector.load %arg2[%c0_1, %c0_2] : memref<16x128xbf16, #tpu.memory_space<vmem>>, vector<16x128xbf16>
    %cst = arith.constant dense<0.000000e+00> : vector<8x128xf32>
    %2 = tpu.matmul %0, %1, %cst {dimension_numbers = #tpu.dot_dimension_numbers<[1], [0], [0], [1], [0, 0, 1, 1], [], []>} : vector<8x16xbf16>, vector<16x128xbf16>, vector<8x128xf32> -> vector<8x128xf32>
    %c0_3 = arith.constant 0 : index
    %c0_4 = arith.constant 0 : index
    %3 = vector.load %arg3[%c0_3, %c0_4] : memref<1x128xf32, #tpu.memory_space<vmem>>, vector<1x128xf32>
    %4 = vector.broadcast %3 : vector<1x128xf32> to vector<8x128xf32>
    %5 = arith.addf %2, %4 : vector<8x128xf32>
    %c0_5 = arith.constant 0 : index
    %c0_6 = arith.constant 0 : index
    %6 = vector.load %arg4[%c0_5, %c0_6] : memref<8x128xf32, #tpu.memory_space<vmem>>, vector<8x128xf32>
    tpu.vector_store %arg4[%c0_5, %c0_6], %5 {strides = array<i32>} : memref<8x128xf32, #tpu.memory_space<vmem>>, vector<8x128xf32>,
    return
  }
  func.func @transform_0(%arg0: i32) -> (i32, i32) {
    %c0_i32 = arith.constant 0 : i32
    %c0_i32_0 = arith.constant 0 : i32
    %c0_i32_1 = arith.constant 0 : i32
    return %c0_i32, %c0_i32_0 : i32, i32
  }
  func.func @transform_1(%arg0: i32) -> (i32, i32) {
    %c0_i32 = arith.constant 0 : i32
    %c0_i32_0 = arith.constant 0 : i32
    return %c0_i32, %arg0 : i32, i32
  }
  func.func @transform_2(%arg0: i32) -> (i32, i32) {
    %c0_i32 = arith.constant 0 : i32
    %c0_i32_0 = arith.constant 0 : i32
    return %c0_i32, %arg0 : i32, i32
  }
  func.func @transform_3(%arg0: i32) -> (i32, i32) {
    %c0_i32 = arith.constant 0 : i32
    %c0_i32_0 = arith.constant 0 : i32
    return %c0_i32, %arg0 : i32, i32
  }
}

</mosaic_0001>

<bundles_post_ra>
// kernel: kopa_forward.1
= control target key start
LH: loop header
LB: loop body
LE: loop exit
PB: predicated region body
PF: predicated region fallthrough
CT: control target
= control target key end

     0   :  { %s416_s12 = smov 0   ;;  %s418_s13 = smov 0   ;;  %s476_s0 = inlined_call_operand.vmem [shape: bf16[8,16], index: 0, kind: input, shape index: {}]   ;;  %s477_s1 = inlined_call_operand.vmem [shape: bf16[16,256], index: 1, kind: input, shape index: {}]   ;;  %s478_s2 = inlined_call_operand.vmem [shape: f32[1,256], index: 2, kind: input, shape index: {}]   ;;  %s479_s3 = inlined_call_operand.vmem [shape: f32[8,256], index: 3, kind: output, shape index: {}]  }
   0x1   :  { %s420_s14 = smov 0  }
   0x2 LB: > { %s330_s15 = sadd.s32 4294967295, %s394_s14   ;;  %s433_s16 = sadd.s32 1, %s394_s14   ;;  %s394_s14 = sphi %s420_s14, %s482_s14   ;;  %s390_s13 = sphi %s418_s13, %s481_s13   ;;  %s386_s12 = sphi %s416_s12, %s480_s12  }
   0x3   : > { %s38_s17 = ssub.s32 %s394_s14, %s433_s16  ;;  %s41_s18 = sadd.s32 1, %s390_s13 }
   0x4   : > { %p39_p0 = scmp.eq.s32.totalorder %s38_s17, 0  ;;  %p48_p1 = scmp.ne.s32.totalorder %s390_s13, %s386_s12 }
   0x5   : > { %p49_p2 = scmp.eq.s32.totalorder %s394_s14, 0  ;;  %p333_p4 = scmp.ge.s32.totalorder %s394_s14, 2 }
   0x6   : > { %s442_s19 = scalar_select %p39_p0, %s390_s13, %s41_s18  }
   0x7   : > { %p50_p3 = por %p49_p2, %p48_p1  ;;  %129 = sbr.rel (%p333_p4) target bundleno = 18 (0x12), region = 20 }
   0xc   : > { %132 = sbr.rel (!%p50_p3) target bundleno = 18 (0x12), region = 24  ;;  %s134_s20 = sand.u32 (%p50_p3), 1, %s390_s13  }
   0xd   : > { %s335_s21 = sshll.u32 (%p50_p3), %s394_s14, 2  ;;  %s334_s22 = sshll.u32 (%p50_p3), %s134_s20, 3 }
   0xe   : > { %s138_s25 = scalar_lea.vmem (%p50_p3), %s477_s1, %s335_s21  ;;  %s136_s26 = scalar_lea.vmem (%p50_p3), [#allocation2], %s334_s22 }
   0xf   : > { %v155_v0 = vld [vmem:[%s138_s25] sm:$0xf] (%p50_p3)  ;;  %v157_v1 = vld [vmem:[%s138_s25 + $0x8] sm:$0xf] (%p50_p3) }
  0x10   : > { %156 = vst [vmem:[%s136_s26] sm:$0xf] (%p50_p3), %v155_v0 }
  0x11   : > { %158 = vst [vmem:[%s136_s26 + $0x4] sm:$0xf] %v157_v1 }
  0x12 PF: > { %p336_p5 = scmp.ge.s32.totalorder %s394_s14, 1  ;;  %p191_p6 = scmp.lt.s32.totalorder %s394_s14, 3 }
  0x14   : > { %p192_p7 = pnand %p336_p5, %p191_p6 }
  0x15   : > { %s198_s27 = sand.u32 (!%p192_p7), 1, %s386_s12   ;;  %p223_p8 = scmp.lt.s32.totalorder (!%p192_p7), %s330_s15, 1 }
  0x16   : > { %195 = sbr.rel (%p192_p7) target bundleno = 165 (0xa5), region = 69  ;;  %s337_s28 = sshll.u32 (!%p192_p7), %s198_s27, 3 }
  0x17   : > { %s200_s29 = scalar_lea.vmem (!%p192_p7), [#allocation2], %s337_s28 }
  0x1b   : > { %v346_v2 = vld [vmem:[%s200_s29] sm:$0xff]  ;;  %s484_s15 = smov (!%p223_p8, %s330_s15), 1  ;;  %vm244_vm0 = vcmask 130048  }
  0x1c   : > { %255 = vmatpush.bf16.msra.mxu0 %v346_v2  ;;  %v231_v3 = vld [vmem:[%s476_s0] sm:$0xf]  ;;  %s225_s7 = scalar_lea.vmem %s478_s2, %s484_s15  ;;  %s338_s8 = sshll.u32 %s484_s15, 3 }
  0x1d   : > { %v371_v4 = vld [vmem:[%s225_s7] ss:$0 sm:$0xff]  ;;  %s229_s11 = scalar_lea.vmem %s479_s3, %s338_s8 }
  0x1f   : > { %343 = vmatmul.msk.bf16.vlgmr.msra.gmra.mxu0 %vm244_vm0, %v231_v3 }
  0x9c   : > { %v257_v5 = vpop.f32.mrf.mxu0 }
  0x9d   : > { %v258_v6 = vadd.f32 %v371_v4, %v257_v5 }
  0x9f   : > { %261 = vst [vmem:[%s229_s11] sm:$0xff] %v258_v6 }
  0xa4   : > { %v259_v7 = vpop.f32.mrf.mxu0 }
  0xa5 PF: > { %p10_p9 = scmp.ge.s32.totalorder %s433_s16, 4   ;;  %s480_s12 = smov %s390_s13 }
  0xa6   : > { %s481_s13 = smov %s442_s19  ;;  %s482_s14 = smov %s433_s16 }
  0xa7   :  { %12 = sbr.rel (!%p10_p9) target bundleno = 2 (0x2), region = 111 }

</bundles_post_ra>
